<compile_context>
chip_gen: v7x
topology: tpu7x:2x2x1
jax: 0.10.0
libtpu: 0.0.40
codegen_flags: <defaults>
</compile_context>

<pallas_src>
import functools

import jax
import jax.numpy as jnp
from jax import lax
from jax.experimental import pallas as pl
from jax.experimental.pallas import tpu as pltpu

LANES = 128      # single lane-dense output segment holding all four heads
MAX_BLK = 1024   # batch rows per grid step (fits comfortably in VMEM on v5e/v6e/v7x)
BN_EPS = 1e-5


def _round_up(x, m):
    return (x + m - 1) // m * m


def code_predictor_kernel(feat_ref, w_ref, aux_ref, out_ref, sum_ref, sq_ref,
                          *, blk, n_valid, nz_shape, nz_rot):
    """Two-pass fused CodePredictor.

    grid = (2, nb):  p = program_id(0): 0 = BN-stats pass, 1 = compute/write pass
                     b = program_id(1): batch block
    aux rows: 0 = bn_gamma (lanes [0, nz_shape)), 1 = bn_beta, rest pad.
    Heads packed densely in one 128-lane segment:
      shape @ 0, scale @ nz_shape, quat @ nz_shape+3, trans @ nz_shape+3+nz_rot.
    """
    p = pl.program_id(0)
    b = pl.program_id(1)

    scale_off = nz_shape
    quat_off = nz_shape + 3
    trans_off = quat_off + nz_rot

    # One MXU matmul for all four heads; bias (and the scale head's "+1") is a
    # folded-in extra contraction row (feat is augmented with a ones column).
    lin = jnp.dot(feat_ref[...], w_ref[...],
                  preferred_element_type=jnp.float32)              # (blk, 128)

    # ---------------- pass 0: accumulate global BatchNorm statistics ---------
    @pl.when(p == 0)
    def _stats_pass():
        @pl.when(b == 0)
        def _init():
            sum_ref[...] = jnp.zeros_like(sum_ref)
            sq_ref[...] = jnp.zeros_like(sq_ref)

        # Mask out batch-padding rows so they do not pollute the statistics.
        row = b * blk + lax.broadcasted_iota(jnp.int32, (blk, 1), 0)
        lin_m = jnp.where(row < n_valid, lin, 0.0)
        sum_ref[...] += jnp.sum(lin_m, axis=0, keepdims=True)
        sq_ref[...] += jnp.sum(lin_m * lin_m, axis=0, keepdims=True)

    # ---------------- pass 1: finalize stats, apply heads, write output ------
    @pl.when(p == 1)
    def _compute_pass():
        @pl.when(b == 0)
        def _finalize():
            inv_n = 1.0 / n_valid
            mean = sum_ref[...] * inv_n
            var = jnp.maximum(sq_ref[...] * inv_n - mean * mean, 0.0)  # biased
            sum_ref[...] = mean                       # reuse scratch: mean
            sq_ref[...] = lax.rsqrt(var + BN_EPS)     # reuse scratch: 1/std

        mean = sum_ref[...]
        inv_std = sq_ref[...]

        lane = lax.broadcasted_iota(jnp.int32, (1, LANES), 1)
        shape_m = lane < scale_off
        scale_m = jnp.logical_and(lane >= scale_off, lane < quat_off)
        quat_m = jnp.logical_and(lane >= quat_off, lane < trans_off)

        # ShapePredictor: BatchNorm1d (training stats) -> LeakyReLU(0.2)
        sbn = (lin - mean) * inv_std * aux_ref[0:1, :] + aux_ref[1:2, :]
        shape_out = jnp.where(sbn >= 0.0, sbn, 0.2 * sbn)

        # ScalePredictor: relu(Linear + 1) + 1e-12   ("+1" folded into the bias)
        scale_out = jnp.maximum(lin, 0.0) + 1e-12

        # QuatPredictor (classify_rot=True): log_softmax over the nz_rot lanes.
        # Mask BEFORE the exp so padded lanes underflow to 0 (no inf*0 -> NaN).
        q_vals = jnp.where(quat_m, lin, -1e30)
        q_max = jnp.max(q_vals, axis=-1, keepdims=True)
        lse = jnp.log(jnp.sum(jnp.exp(q_vals - q_max), axis=-1, keepdims=True))
        quat_out = (lin - q_max) - lse

        # TransPredictor: plain Linear -> remaining lanes keep `lin`.
        out = jnp.where(shape_m, shape_out,
              jnp.where(scale_m, scale_out,
              jnp.where(quat_m, quat_out, lin)))
        out_ref[...] = out


def pack_params(params, nz_feat, nz_shape, nz_rot):
    """Pack weights+bias into (nz_feat+1, 128) and BN gamma/beta into (8, 128)."""
    total = nz_shape + 3 + nz_rot + 3
    assert total <= LANES, (
        f"packed head width {total} > {LANES}; "
        "TODO(synk): multi-segment fallback for very wide shape codes")
    scale_off = nz_shape
    quat_off = nz_shape + 3
    trans_off = quat_off + nz_rot

    w_cat = jnp.zeros((nz_feat + 1, LANES), jnp.float32)
    w_cat = w_cat.at[:nz_feat, 0:nz_shape].set(params["w_shape"])
    w_cat = w_cat.at[:nz_feat, scale_off:scale_off + 3].set(params["w_scale"])
    w_cat = w_cat.at[:nz_feat, quat_off:quat_off + nz_rot].set(params["w_quat"])
    w_cat = w_cat.at[:nz_feat, trans_off:trans_off + 3].set(params["w_trans"])
    # Bias row (contracts against the ones column of feat); fold scale's "+1".
    w_cat = w_cat.at[nz_feat, 0:nz_shape].set(params["b_shape"][0])
    w_cat = w_cat.at[nz_feat, scale_off:scale_off + 3].set(params["b_scale"][0] + 1.0)
    w_cat = w_cat.at[nz_feat, quat_off:quat_off + nz_rot].set(params["b_quat"][0])
    w_cat = w_cat.at[nz_feat, trans_off:trans_off + 3].set(params["b_trans"][0])

    aux = jnp.zeros((8, LANES), jnp.float32)
    aux = aux.at[0, 0:nz_shape].set(params["bn_gamma"][0])
    aux = aux.at[1, 0:nz_shape].set(params["bn_beta"][0])
    return w_cat, aux


def code_predictor(feat, params, block_rows=None):
    """feat: (B, nz_feat) f32. Returns (shape_pred, scale_pred, quat_pred, trans_pred)."""
    B, nz_feat = feat.shape
    nz_shape = params["w_shape"].shape[1]
    nz_rot = params["w_quat"].shape[1]
    scale_off = nz_shape
    quat_off = nz_shape + 3
    trans_off = quat_off + nz_rot

    w_cat, aux = pack_params(params, nz_feat, nz_shape, nz_rot)

    blk = min(MAX_BLK, _round_up(B, 8)) if block_rows is None else block_rows
    assert blk % 8 == 0, "block_rows must be a multiple of 8"
    b_pad = _round_up(B, blk)
    nb = b_pad // blk

    # Augment feat with a ones column (bias row of w_cat) and pad the batch.
    feat_aug = jnp.concatenate(
        [feat.astype(jnp.float32), jnp.ones((B, 1), jnp.float32)], axis=1)
    if b_pad != B:
        feat_aug = jnp.pad(feat_aug, ((0, b_pad - B), (0, 0)))

    kernel = functools.partial(code_predictor_kernel, blk=blk, n_valid=B,
                               nz_shape=nz_shape, nz_rot=nz_rot)

    out = pl.pallas_call(
        kernel,
        out_shape=jax.ShapeDtypeStruct((b_pad, LANES), jnp.float32),
        grid_spec=pltpu.PrefetchScalarGridSpec(
            num_scalar_prefetch=0,
            grid=(2, nb),   # (pass, batch block); pass 0 = BN stats, pass 1 = write
            in_specs=[
                pl.BlockSpec((blk, nz_feat + 1), lambda p, b: (b, 0)),   # feat tile
                pl.BlockSpec((nz_feat + 1, LANES), lambda p, b: (0, 0)),  # resident W
                pl.BlockSpec((8, LANES), lambda p, b: (0, 0)),            # resident aux
            ],
            out_specs=pl.BlockSpec((blk, LANES), lambda p, b: (b, 0)),
            scratch_shapes=[pltpu.VMEM((1, LANES), jnp.float32),   # sum  -> mean
                            pltpu.VMEM((1, LANES), jnp.float32)],  # sumsq -> 1/std
        ),
        compiler_params=pltpu.CompilerParams(
            # Both axes sequential: pass order matters, and all batch blocks
            # feed a single BN-stats accumulator in VMEM scratch.
            dimension_semantics=("arbitrary", "arbitrary")),
    )(feat_aug, w_cat, aux)

    shape_pred = out[:B, 0:nz_shape]
    scale_pred = out[:B, scale_off:scale_off + 3]
    quat_pred = out[:B, quat_off:quat_off + nz_rot]
    trans_pred = out[:B, trans_off:trans_off + 3]
    return shape_pred, scale_pred, quat_pred, trans_pred


def init_params(key, nz_feat, nz_shape, nz_rot):
    ks = jax.random.split(key, 8)

    def lin(kw, kb, nin, nout, scale=0.1):
        w = scale * jax.random.normal(kw, (nin, nout), jnp.float32)  # (in, out)
        b = scale * jax.random.normal(kb, (1, nout), jnp.float32)
        return w, b

    w_shape, b_shape = lin(ks[0], ks[1], nz_feat, nz_shape)
    w_scale, b_scale = lin(ks[2], ks[3], nz_feat, 3)
    w_quat, b_quat = lin(ks[4], ks[5], nz_feat, nz_rot)
    w_trans, b_trans = lin(ks[6], ks[7], nz_feat, 3)

    return {
        "w_shape": w_shape, "b_shape": b_shape,
        # BatchNorm1d init: gamma=1, beta=0
        "bn_gamma": jnp.ones((1, nz_shape), jnp.float32),
        "bn_beta": jnp.zeros((1, nz_shape), jnp.float32),
        "w_scale": w_scale, "b_scale": b_scale,
        "w_quat": w_quat, "b_quat": b_quat,
        "w_trans": w_trans, "b_trans": b_trans,
    }


def reference(feat, p):
    """Pure-JAX reference for a sanity check."""
    shape_lin = feat @ p["w_shape"] + p["b_shape"]
    mean = jnp.mean(shape_lin, axis=0, keepdims=True)
    var = jnp.mean((shape_lin - mean) ** 2, axis=0, keepdims=True)
    sb = (shape_lin - mean) / jnp.sqrt(var + BN_EPS) * p["bn_gamma"] + p["bn_beta"]
    shape_pred = jnp.where(sb >= 0, sb, 0.2 * sb)
    scale_pred = jnp.maximum(feat @ p["w_scale"] + p["b_scale"] + 1.0, 0.0) + 1e-12
    quat_pred = jax.nn.log_softmax(feat @ p["w_quat"] + p["b_quat"], axis=-1)
    trans_pred = feat @ p["w_trans"] + p["b_trans"]
    return shape_pred, scale_pred, quat_pred, trans_pred


if __name__ == "__main__":
    B, nz_feat, nz_shape, nz_rot = 8, 32, 16, 4

    key = jax.random.PRNGKey(0)
    k_feat, k_params, k_feat2 = jax.random.split(key, 3)
    feat = jax.random.normal(k_feat, (B, nz_feat), jnp.float32)
    params = init_params(k_params, nz_feat, nz_shape, nz_rot)

    # Single-block path (B=8 -> one 8-row block).
    outs = jax.block_until_ready(code_predictor(feat, params))
    refs = reference(feat, params)
    for o, r in zip(outs, refs):
        assert o.shape == r.shape
        assert float(jnp.max(jnp.abs(o - r))) < 1e-4

    # Multi-block path: B=20 with 8-row blocks -> 3 batch blocks + 4 padded
    # rows, exercising the two-pass global-BN accumulation and row masking.
    B2 = 20
    feat2 = jax.random.normal(k_feat2, (B2, nz_feat), jnp.float32)
    outs2 = jax.block_until_ready(code_predictor(feat2, params, block_rows=8))
    refs2 = reference(feat2, params)
    for o, r in zip(outs2, refs2):
        assert o.shape == r.shape
        assert float(jnp.max(jnp.abs(o - r))) < 1e-4

    print("KERNEL_OK")
</pallas_src>

<mosaic_0001>
module attributes {stable_mosaic.version = 11 : i64} {
  func.func @code_predictor_kernel(%arg0: i32, %arg1: i32, %arg2: memref<8x33xf32, #tpu.memory_space<vmem>>, %arg3: memref<33x128xf32, #tpu.memory_space<vmem>>, %arg4: memref<8x128xf32, #tpu.memory_space<vmem>>, %arg5: memref<8x128xf32, #tpu.memory_space<vmem>>, %arg6: memref<1x128xf32, #tpu.memory_space<vmem>>, %arg7: memref<1x128xf32, #tpu.memory_space<vmem>>) attributes {dimension_semantics = [#tpu.dimension_semantics<arbitrary>, #tpu.dimension_semantics<arbitrary>], iteration_bounds = array<i64: 2, 1>, scalar_prefetch = 0 : i64, scratch_operands = 2 : i64, tpu.core_type = #tpu.core_type<tc>, window_params = [{transform_indices = @transform_0, window_bounds = array<i64: 8, 33>}, {pipeline_mode = #tpu.pipeline_mode<synchronous>, transform_indices = @transform_1, window_bounds = array<i64: 33, 128>}, {pipeline_mode = #tpu.pipeline_mode<synchronous>, transform_indices = @transform_2, window_bounds = array<i64: 8, 128>}, {transform_indices = @transform_3, window_bounds = array<i64: 8, 128>}]} {
    %c0 = arith.constant 0 : index
    %c0_0 = arith.constant 0 : index
    %0 = vector.load %arg2[%c0, %c0_0] : memref<8x33xf32, #tpu.memory_space<vmem>>, vector<8x33xf32>
    %c0_1 = arith.constant 0 : index
    %c0_2 = arith.constant 0 : index
    %1 = vector.load %arg3[%c0_1, %c0_2] : memref<33x128xf32, #tpu.memory_space<vmem>>, vector<33x128xf32>
    %cst = arith.constant dense<0.000000e+00> : vector<8x128xf32>
    %2 = tpu.matmul %0, %1, %cst {dimension_numbers = #tpu.dot_dimension_numbers<[1], [0], [0], [1], [0, 0, 1, 1], [], []>} : vector<8x33xf32>, vector<33x128xf32>, vector<8x128xf32> -> vector<8x128xf32>
    %c0_i32 = arith.constant 0 : i32
    %3 = arith.cmpi eq, %arg0, %c0_i32 : i32
    %4 = arith.extui %3 : i1 to i32
    %c0_i32_3 = arith.constant 0 : i32
    %5 = arith.cmpi ne, %4, %c0_i32_3 : i32
    scf.if %5 {
      %c0_i32_5 = arith.constant 0 : i32
      %9 = arith.cmpi eq, %arg1, %c0_i32_5 : i32
      %10 = arith.extui %9 : i1 to i32
      %c0_i32_6 = arith.constant 0 : i32
      %11 = arith.cmpi ne, %10, %c0_i32_6 : i32
      scf.if %11 {
        %cst_19 = arith.constant 0.000000e+00 : f32
        %33 = vector.broadcast %cst_19 : f32 to vector<1x128xf32>
        %c0_20 = arith.constant 0 : index
        %c0_21 = arith.constant 0 : index
        %34 = vector.load %arg6[%c0_20, %c0_21] : memref<1x128xf32, #tpu.memory_space<vmem>>, vector<1x128xf32>
        tpu.vector_store %arg6[%c0_20, %c0_21], %33 {strides = array<i32>} : memref<1x128xf32, #tpu.memory_space<vmem>>, vector<1x128xf32>,
        %cst_22 = arith.constant 0.000000e+00 : f32
        %35 = vector.broadcast %cst_22 : f32 to vector<1x128xf32>
        %c0_23 = arith.constant 0 : index
        %c0_24 = arith.constant 0 : index
        %36 = vector.load %arg7[%c0_23, %c0_24] : memref<1x128xf32, #tpu.memory_space<vmem>>, vector<1x128xf32>
        tpu.vector_store %arg7[%c0_23, %c0_24], %35 {strides = array<i32>} : memref<1x128xf32, #tpu.memory_space<vmem>>, vector<1x128xf32>,
      } else {
      }
      %c8_i32 = arith.constant 8 : i32
      %12 = arith.muli %arg1, %c8_i32 : i32
      %13 = tpu.iota {dimensions = array<i32: 0>} : vector<8x1xi32>
      %14 = vector.broadcast %12 : i32 to vector<8x1xi32>
      %15 = arith.addi %14, %13 : vector<8x1xi32>
      %c8_i32_7 = arith.constant 8 : i32
      %16 = vector.broadcast %c8_i32_7 : i32 to vector<8x1xi32>
      %17 = arith.cmpi slt, %15, %16 : vector<8x1xi32>
      %cst_8 = arith.constant 0.000000e+00 : f32
      %18 = vector.shape_cast %17 : vector<8x1xi1> to vector<8x1xi1>
      %19 = vector.broadcast %18 : vector<8x1xi1> to vector<8x128xi1>
      %20 = vector.broadcast %cst_8 : f32 to vector<8x128xf32>
      %21 = arith.select %19, %2, %20 : vector<8x128xi1>, vector<8x128xf32>
      %c0_9 = arith.constant 0 : index
      %c0_10 = arith.constant 0 : index
      %22 = vector.load %arg6[%c0_9, %c0_10] : memref<1x128xf32, #tpu.memory_space<vmem>>, vector<1x128xf32>
      %cst_11 = arith.constant dense<0.000000e+00> : vector<128xf32>
      %23 = vector.multi_reduction <add>, %21, %cst_11 [0] : vector<8x128xf32> to vector<128xf32>
      %24 = vector.shape_cast %23 : vector<128xf32> to vector<1x128xf32>
      %25 = arith.addf %22, %24 : vector<1x128xf32>
      %c0_12 = arith.constant 0 : index
      %c0_13 = arith.constant 0 : index
      %26 = vector.load %arg6[%c0_12, %c0_13] : memref<1x128xf32, #tpu.memory_space<vmem>>, vector<1x128xf32>
      tpu.vector_store %arg6[%c0_12, %c0_13], %25 {strides = array<i32>} : memref<1x128xf32, #tpu.memory_space<vmem>>, vector<1x128xf32>,
      %c0_14 = arith.constant 0 : index
      %c0_15 = arith.constant 0 : index
      %27 = vector.load %arg7[%c0_14, %c0_15] : memref<1x128xf32, #tpu.memory_space<vmem>>, vector<1x128xf32>
      %28 = arith.mulf %21, %21 : vector<8x128xf32>
      %cst_16 = arith.constant dense<0.000000e+00> : vector<128xf32>
      %29 = vector.multi_reduction <add>, %28, %cst_16 [0] : vector<8x128xf32> to vector<128xf32>
      %30 = vector.shape_cast %29 : vector<128xf32> to vector<1x128xf32>
      %31 = arith.addf %27, %30 : vector<1x128xf32>
      %c0_17 = arith.constant 0 : index
      %c0_18 = arith.constant 0 : index
      %32 = vector.load %arg7[%c0_17, %c0_18] : memref<1x128xf32, #tpu.memory_space<vmem>>, vector<1x128xf32>
      tpu.vector_store %arg7[%c0_17, %c0_18], %31 {strides = array<i32>} : memref<1x128xf32, #tpu.memory_space<vmem>>, vector<1x128xf32>,
    } else {
    }
    %c1_i32 = arith.constant 1 : i32
    %6 = arith.cmpi eq, %arg0, %c1_i32 : i32
    %7 = arith.extui %6 : i1 to i32
    %c0_i32_4 = arith.constant 0 : i32
    %8 = arith.cmpi ne, %7, %c0_i32_4 : i32
    scf.if %8 {
      %c0_i32_5 = arith.constant 0 : i32
      %9 = arith.cmpi eq, %arg1, %c0_i32_5 : i32
      %10 = arith.extui %9 : i1 to i32
      %c0_i32_6 = arith.constant 0 : i32
      %11 = arith.cmpi ne, %10, %c0_i32_6 : i32
      scf.if %11 {
        %c0_25 = arith.constant 0 : index
        %c0_26 = arith.constant 0 : index
        %72 = vector.load %arg6[%c0_25, %c0_26] : memref<1x128xf32, #tpu.memory_space<vmem>>, vector<1x128xf32>
        %cst_27 = arith.constant 1.250000e-01 : f32
        %73 = vector.broadcast %cst_27 : f32 to vector<1x128xf32>
        %74 = arith.mulf %72, %73 : vector<1x128xf32>
        %c0_28 = arith.constant 0 : index
        %c0_29 = arith.constant 0 : index
        %75 = vector.load %arg7[%c0_28, %c0_29] : memref<1x128xf32, #tpu.memory_space<vmem>>, vector<1x128xf32>
        %cst_30 = arith.constant 1.250000e-01 : f32
        %76 = vector.broadcast %cst_30 : f32 to vector<1x128xf32>
        %77 = arith.mulf %75, %76 : vector<1x128xf32>
        %78 = arith.mulf %74, %74 : vector<1x128xf32>
        %79 = arith.subf %77, %78 : vector<1x128xf32>
        %cst_31 = arith.constant 0.000000e+00 : f32
        %80 = vector.broadcast %cst_31 : f32 to vector<1x128xf32>
        %81 = arith.maximumf %79, %80 : vector<1x128xf32>
        %c0_32 = arith.constant 0 : index
        %c0_33 = arith.constant 0 : index
        %82 = vector.load %arg6[%c0_32, %c0_33] : memref<1x128xf32, #tpu.memory_space<vmem>>, vector<1x128xf32>
        tpu.vector_store %arg6[%c0_32, %c0_33], %74 {strides = array<i32>} : memref<1x128xf32, #tpu.memory_space<vmem>>, vector<1x128xf32>,
        %cst_34 = arith.constant 9.99999974E-6 : f32
        %83 = vector.broadcast %cst_34 : f32 to vector<1x128xf32>
        %84 = arith.addf %81, %83 : vector<1x128xf32>
        %85 = math.rsqrt %84 : vector<1x128xf32>
        %c0_35 = arith.constant 0 : index
        %c0_36 = arith.constant 0 : index
        %86 = vector.load %arg7[%c0_35, %c0_36] : memref<1x128xf32, #tpu.memory_space<vmem>>, vector<1x128xf32>
        tpu.vector_store %arg7[%c0_35, %c0_36], %85 {strides = array<i32>} : memref<1x128xf32, #tpu.memory_space<vmem>>, vector<1x128xf32>,
      } else {
      }
      %c0_7 = arith.constant 0 : index
      %c0_8 = arith.constant 0 : index
      %12 = vector.load %arg6[%c0_7, %c0_8] : memref<1x128xf32, #tpu.memory_space<vmem>>, vector<1x128xf32>
      %c0_9 = arith.constant 0 : index
      %c0_10 = arith.constant 0 : index
      %13 = vector.load %arg7[%c0_9, %c0_10] : memref<1x128xf32, #tpu.memory_space<vmem>>, vector<1x128xf32>
      %14 = tpu.iota {dimensions = array<i32: 1>} : vector<1x128xi32>
      %c16_i32 = arith.constant 16 : i32
      %15 = vector.broadcast %c16_i32 : i32 to vector<1x128xi32>
      %16 = arith.cmpi slt, %14, %15 : vector<1x128xi32>
      %c16_i32_11 = arith.constant 16 : i32
      %17 = vector.broadcast %c16_i32_11 : i32 to vector<1x128xi32>
      %18 = arith.cmpi sge, %14, %17 : vector<1x128xi32>
      %c19_i32 = arith.constant 19 : i32
      %19 = vector.broadcast %c19_i32 : i32 to vector<1x128xi32>
      %20 = arith.cmpi slt, %14, %19 : vector<1x128xi32>
      %21 = arith.andi %18, %20 : vector<1x128xi1>
      %c19_i32_12 = arith.constant 19 : i32
      %22 = vector.broadcast %c19_i32_12 : i32 to vector<1x128xi32>
      %23 = arith.cmpi sge, %14, %22 : vector<1x128xi32>
      %c23_i32 = arith.constant 23 : i32
      %24 = vector.broadcast %c23_i32 : i32 to vector<1x128xi32>
      %25 = arith.cmpi slt, %14, %24 : vector<1x128xi32>
      %26 = arith.andi %23, %25 : vector<1x128xi1>
      %27 = vector.broadcast %12 : vector<1x128xf32> to vector<8x128xf32>
      %28 = arith.subf %2, %27 : vector<8x128xf32>
      %29 = vector.broadcast %13 : vector<1x128xf32> to vector<8x128xf32>
      %30 = arith.mulf %28, %29 : vector<8x128xf32>
      %c0_13 = arith.constant 0 : index
      %c0_14 = arith.constant 0 : index
      %31 = vector.load %arg4[%c0_13, %c0_14] : memref<8x128xf32, #tpu.memory_space<vmem>>, vector<1x128xf32>
      %32 = vector.broadcast %31 : vector<1x128xf32> to vector<8x128xf32>
      %33 = arith.mulf %30, %32 : vector<8x128xf32>
      %c1 = arith.constant 1 : index
      %c0_15 = arith.constant 0 : index
      %34 = vector.load %arg4[%c1, %c0_15] : memref<8x128xf32, #tpu.memory_space<vmem>>, vector<1x128xf32>
      %35 = vector.broadcast %34 : vector<1x128xf32> to vector<8x128xf32>
      %36 = arith.addf %33, %35 : vector<8x128xf32>
      %cst_16 = arith.constant 0.000000e+00 : f32
      %37 = vector.broadcast %cst_16 : f32 to vector<8x128xf32>
      %38 = arith.cmpf oge, %36, %37 : vector<8x128xf32>
      %cst_17 = arith.constant 2.000000e-01 : f32
      %39 = vector.broadcast %cst_17 : f32 to vector<8x128xf32>
      %40 = arith.mulf %39, %36 : vector<8x128xf32>
      %41 = arith.select %38, %36, %40 : vector<8x128xi1>, vector<8x128xf32>
      %cst_18 = arith.constant 0.000000e+00 : f32
      %42 = vector.broadcast %cst_18 : f32 to vector<8x128xf32>
      %43 = arith.maximumf %2, %42 : vector<8x128xf32>
      %cst_19 = arith.constant 9.99999996E-13 : f32
      %44 = vector.broadcast %cst_19 : f32 to vector<8x128xf32>
      %45 = arith.addf %43, %44 : vector<8x128xf32>
      %cst_20 = arith.constant -1.000000e+30 : f32
      %46 = vector.shape_cast %26 : vector<1x128xi1> to vector<1x128xi1>
      %47 = vector.broadcast %46 : vector<1x128xi1> to vector<8x128xi1>
      %48 = vector.broadcast %cst_20 : f32 to vector<8x128xf32>
      %49 = arith.select %47, %2, %48 : vector<8x128xi1>, vector<8x128xf32>
      %cst_21 = arith.constant dense<0xFF800000> : vector<8xf32>
      %50 = vector.multi_reduction <maximumf>, %49, %cst_21 [1] : vector<8x128xf32> to vector<8xf32>
      %51 = vector.shape_cast %50 : vector<8xf32> to vector<8x1xf32>
      %52 = vector.broadcast %51 : vector<8x1xf32> to vector<8x128xf32>
      %53 = arith.subf %49, %52 : vector<8x128xf32>
      %54 = math.exp %53 : vector<8x128xf32>
      %cst_22 = arith.constant dense<0.000000e+00> : vector<8xf32>
      %55 = vector.multi_reduction <add>, %54, %cst_22 [1] : vector<8x128xf32> to vector<8xf32>
      %56 = vector.shape_cast %55 : vector<8xf32> to vector<8x1xf32>
      %57 = math.log %56 : vector<8x1xf32>
      %58 = vector.broadcast %51 : vector<8x1xf32> to vector<8x128xf32>
      %59 = arith.subf %2, %58 : vector<8x128xf32>
      %60 = vector.broadcast %57 : vector<8x1xf32> to vector<8x128xf32>
      %61 = arith.subf %59, %60 : vector<8x128xf32>
      %62 = vector.shape_cast %26 : vector<1x128xi1> to vector<1x128xi1>
      %63 = vector.broadcast %62 : vector<1x128xi1> to vector<8x128xi1>
      %64 = arith.select %63, %61, %2 : vector<8x128xi1>, vector<8x128xf32>
      %65 = vector.shape_cast %21 : vector<1x128xi1> to vector<1x128xi1>
      %66 = vector.broadcast %65 : vector<1x128xi1> to vector<8x128xi1>
      %67 = arith.select %66, %45, %64 : vector<8x128xi1>, vector<8x128xf32>
      %68 = vector.shape_cast %16 : vector<1x128xi1> to vector<1x128xi1>
      %69 = vector.broadcast %68 : vector<1x128xi1> to vector<8x128xi1>
      %70 = arith.select %69, %41, %67 : vector<8x128xi1>, vector<8x128xf32>
      %c0_23 = arith.constant 0 : index
      %c0_24 = arith.constant 0 : index
      %71 = vector.load %arg5[%c0_23, %c0_24] : memref<8x128xf32, #tpu.memory_space<vmem>>, vector<8x128xf32>
      tpu.vector_store %arg5[%c0_23, %c0_24], %70 {strides = array<i32>} : memref<8x128xf32, #tpu.memory_space<vmem>>, vector<8x128xf32>,
    } else {
    }
    return
  }
  func.func @transform_0(%arg0: i32, %arg1: i32) -> (i32, i32) {
    %c0_i32 = arith.constant 0 : i32
    %c0_i32_0 = arith.constant 0 : i32
    return %arg1, %c0_i32 : i32, i32
  }
  func.func @transform_1(%arg0: i32, %arg1: i32) -> (i32, i32) {
    %c0_i32 = arith.constant 0 : i32
    %c0_i32_0 = arith.constant 0 : i32
    %c0_i32_1 = arith.constant 0 : i32
    return %c0_i32, %c0_i32_0 : i32, i32
  }
  func.func @transform_2(%arg0: i32, %arg1: i32) -> (i32, i32) {
    %c0_i32 = arith.constant 0 : i32
    %c0_i32_0 = arith.constant 0 : i32
    %c0_i32_1 = arith.constant 0 : i32
    return %c0_i32, %c0_i32_0 : i32, i32
  }
  func.func @transform_3(%arg0: i32, %arg1: i32) -> (i32, i32) {
    %c0_i32 = arith.constant 0 : i32
    %c0_i32_0 = arith.constant 0 : i32
    return %arg1, %c0_i32 : i32, i32
  }
}

</mosaic_0001>

<bundles_post_ra>
// kernel: tpu_custom_call.1
= control target key start
LH: loop header
LB: loop body
LE: loop exit
PB: predicated region body
PF: predicated region fallthrough
CT: control target
= control target key end

     0   :  { %8 = vsyncpa [#allocation5], 0  ;;  %s962_s0 = inlined_call_operand.hbm [shape: f32[8,33], index: 0, kind: input, shape index: {}]   ;;  %s963_s1 = inlined_call_operand.hbm [shape: f32[33,128], index: 1, kind: input, shape index: {}]   ;;  %s964_s2 = inlined_call_operand.hbm [shape: f32[8,128], index: 2, kind: input, shape index: {}]   ;;  %s965_s3 = inlined_call_operand.hbm [shape: f32[8,128], index: 3, kind: output, shape index: {}]  }
   0x1   :  { %9 = vsyncpa [#allocation8], 0 }
   0x2   :  { %10 = vsyncpa [#allocation6], 0  ;;  %s782_s12 = smov 0   ;;  %s784_s13 = smov 0  }
   0x3   :  { %s786_s14 = smov 0  }
   0x4 LB: > { %s752_s15 = smov [#allocation7]   ;;  %s486_s17 = sadd.s32 4294967295, %s750_s14   ;;  %s750_s14 = sphi %s786_s14, %s16_s14   ;;  %s746_s13 = sphi %s784_s13, %s980_s13   ;;  %s742_s12 = sphi %s782_s12, %s979_s12  }
   0x5   : > { %s152_s16 = sshll.u32 %s752_s15, 4  ;;  %p487_p0 = scmp.ge.s32.totalorder %s750_s14, 1  ;;  %s806_s16 = int_to_ptr.vmem [resolvable:$true] %s152_s16 }
   0x6   : > { %p127_p1 = scmp.lt.s32.totalorder %s750_s14, 3  ;;  %p802_p2 = scmp.eq.s32.totalorder %s486_s17, 0 }
   0x7   : > { %s28_s21 = sadd.s32 1, %s746_s13  ;;  %s753_s23 = smov [#allocation4]  }
   0x8   : > { %s969_s18 = scalar_select %p802_p2, 1, 0 }
   0x9   : > { %p808_p3 = pnand %p487_p0, %p127_p1  ;;  %p821_p6 = scmp.ge.s32.totalorder %s28_s21, 2 }
   0xa   : > { %s142_s24 = sshll.u32 %s753_s23, 4  ;;  %s606_s27 = scalar_lea.hbm %s963_s1, 640  ;;  %s143_s24 = int_to_ptr.vmem [resolvable:$true] %s142_s24 }
   0xb   : > { %s970_s19 = scalar_select %p808_p3, 1, 0 }
   0xc   : > { %p548_p4 = pneg %p808_p3  ;;  %p607_p7 = scmp.ne.s32.totalorder %s963_s1, %s606_s27 }
   0xd   : > { %p613_p11 = scmp.lt.u32.totalorder %s606_s27, %s963_s1 }
   0xe   : > { %p816_p5 = pnand %p802_p2, %p548_p4 }
  0x10   : > { %p833_p8 = pneg %p816_p5 }
  0x12   : > { %p609_p9 = pnand %p833_p8, %p607_p7 }
  0x14   : > { %p610_p10 = pneg %p609_p9 }
  0x16   : > { %p615_p12 = pnand %p613_p11, %p610_p10 }
  0x18   : > { %618 = shalt.err (!%p615_p12)
}
  0x19   : > { %s619_s6 = scalar_lea.vmem %s806_s16, 640  ;;  %p627_p4 = scmp.lt.s32.totalorder %s806_s16, %s806_s16 }
  0x1a   : > { %p620_p13 = scmp.ne.s32.totalorder %s806_s16, %s619_s6  ;;  %p628_p2 = scmp.lt.s32.totalorder %s619_s6, %s619_s6 }
  0x1c   : > { %p622_p0 = pnand %p620_p13, %p833_p8  ;;  %p629_p7 = por %p628_p2, %p627_p4 }
  0x1e   : > { %p623_p1 = pneg %p622_p0 }
  0x20   : > { %p630_p9 = pnand %p629_p7, %p623_p1 }
  0x22   : > { %633 = shalt.err (!%p630_p9)
}
  0x23   : > { %s754_s7 = smov 128   ;;  %s755_s8 = smov 8  }
  0x24   : > { %554 = dma.hbm_to_vmem [thread:$0]  (!%p816_p5), %s963_s1, 640, %s806_s16, [#allocation8], %s754_s7, %s754_s7, %s755_s8  }
  0x25   : > { %s982_s21 = smov (%p821_p6, %s28_s21), 0  ;;  %s634_s23 = scalar_lea.hbm %s962_s0, 128 }
  0x26   : > { %p635_p2 = scmp.ne.s32.totalorder %s962_s0, %s634_s23  ;;  %p641_p12 = scmp.lt.u32.totalorder %s634_s23, %s962_s0 }
  0x28   : > { %p637_p10 = pnand %p635_p2, %p833_p8 }
  0x2a   : > { %p638_p11 = pneg %p637_p10 }
  0x2c   : > { %p643_p13 = pnand %p641_p12, %p638_p11 }
  0x2e   : > { %646 = shalt.err (!%p643_p13)
}
  0x2f   : > { %s647_s16 = scalar_lea.vmem %s143_s24, 128  ;;  %p655_p4 = scmp.lt.s32.totalorder %s143_s24, %s143_s24 }
  0x30   : > { %p648_p6 = scmp.ne.s32.totalorder %s143_s24, %s647_s16  ;;  %p656_p7 = scmp.lt.s32.totalorder %s647_s16, %s647_s16 }
  0x32   : > { %p650_p0 = pnand %p648_p6, %p833_p8  ;;  %p657_p9 = por %p656_p7, %p655_p4 }
  0x34   : > { %p651_p1 = pneg %p650_p0 }
  0x36   : > { %p658_p3 = pnand %p657_p9, %p651_p1 }
  0x38   : > { %661 = shalt.err (!%p658_p3)
}
  0x39   : > { %551 = dma.hbm_to_vmem [thread:$0]  (!%p816_p5), %s962_s0, 128, %s143_s24, [#allocation5]  }
  0x3a   : > { %s756_s4 = smov [#allocation9]   ;;  %s662_s8 = scalar_lea.hbm %s964_s2, 128 }
  0x3b   : > { %s166_s5 = sshll.u32 %s756_s4, 4  ;;  %p663_p2 = scmp.ne.s32.totalorder %s964_s2, %s662_s8  ;;  %s167_s5 = int_to_ptr.vmem [resolvable:$true] %s166_s5 }
  0x3c   : > { %p669_p11 = scmp.lt.u32.totalorder %s662_s8, %s964_s2 }
  0x3d   : > { %p665_p3 = pnand %p663_p2, %p833_p8 }
  0x3f   : > { %p666_p10 = pneg %p665_p3 }
  0x41   : > { %p671_p12 = pnand %p669_p11, %p666_p10 }
  0x43   : > { %674 = shalt.err (!%p671_p12)
}
  0x44   : > { %s675_s24 = scalar_lea.vmem %s167_s5, 128  ;;  %p683_p1 = scmp.lt.s32.totalorder %s167_s5, %s167_s5 }
  0x45   : > { %p676_p13 = scmp.ne.s32.totalorder %s167_s5, %s675_s24  ;;  %p684_p4 = scmp.lt.s32.totalorder %s675_s24, %s675_s24 }
  0x47   : > { %p678_p6 = pnand %p676_p13, %p833_p8  ;;  %p685_p7 = por %p684_p4, %p683_p1 }
  0x49   : > { %p679_p0 = pneg %p678_p6 }
  0x4b   : > { %p686_p9 = pnand %p685_p7, %p679_p0 }
  0x4d   : > { %689 = shalt.err (!%p686_p9)
}
  0x4e   : > { %557 = dma.hbm_to_vmem [thread:$0]  (!%p816_p5), %s964_s2, 128, %s167_s5, [#allocation8]  }
  0x4f   : > { %p974_p2 = scmp.ne.s32.totalorder %s970_s19, 0 }
  0x50   : > { %p975_p3 = scmp.ne.s32.totalorder (!%p974_p2), %s969_s18, 0 }
  0x51   : > { %179 = sbr.rel (%p974_p2) target bundleno = 684 (0x2ac), region = 32 }
  0x58   : > { %729 = dma.done.wait (%p975_p3), [#allocation5], 128  }
  0x59   : > { %731 = vsyncadd (%p975_p3), [#allocation5], 4294967168 }
  0x5a   : > { %733 = dma.done.wait (%p975_p3), [#allocation8], 768  }
  0x5b   : > { %735 = vsyncadd (%p975_p3), [#allocation8], 4294966528  ;;  %v757_v0 = vmov 0.0|0.0   ;;  %vm758_vm0 = vmmov 0   ;;  %v759_v1 = vmov 0.0   ;;  %v202_v2 = vld [vmem:[#allocation7] sm:$0xff] }
  0x5c   : > { %526 = vmatprep.subr.bf16.mxu0 %v757_v0  ;;  %523 = vmatprep.mubr.msk.f32.mxu0 %vm758_vm0, %v759_v1  ;;  %v203_v3 = vld [vmem:[#allocation7 + $0x8] sm:$0xff]  ;;  %v204_v4 = vld [vmem:[#allocation7 + $0x10] sm:$0xff]  ;;  %v205_v6 = vld [vmem:[#allocation7 + $0x18] sm:$0xff]  ;;  %vm211_vm1 = vcmask 1040384   ;;  %vm207_vm2 = vcmask 269312   ;;  %p497_p5 = scmp.ne.s32.totalorder %s742_s12, 0 }
  0x5d   : > { %v527_v5 = vpack.c.bf16 %v203_v3, %v202_v2  ;;  %v530_v7 = vpack.c.bf16 %v205_v6, %v204_v4  ;;  %v206_v8 = vld [vmem:[#allocation7 + $0x20] sm:$0x1]  ;;  %v201_v9 = vld [vmem:[#allocation4] sm:$0xff]  ;;  %v760_v14 = vmov (!%p497_p5), 0.0  }
  0x5e   : > { %293 = vst [vmem:[#allocation2] sm:$0x1] (!%p497_p5), %v760_v14  ;;  %294 = vst [vmem:[#allocation3] sm:$0x1] (!%p497_p5), %v760_v14 }
  0x5f   : > { %528 = vmatpush3.bf16.msra.mxu0 %v527_v5 }
  0x60   : > { %529 = vmatprep.subr.bf16.mxu0 %v757_v0 }
  0x63   : > { %531 = vmatpush3.bf16.msra.mxu0 %v530_v7 }
  0x64   : > { %521 = vmatprep.subr.mxu0 %v759_v1 }
  0x65   : > { %v304_v23 = vld [vmem:[#allocation2] sm:$0x1] (!%p497_p5)  ;;  %v313_v26 = vld [vmem:[#allocation3] sm:$0x1] (!%p497_p5) }
  0x67   : > { %522 = vmatpush3.msk.msra.mxu0 %vm211_vm1, %v206_v8 }
  0x68   : > { %524 = vmatmul.mubr.msk.f32.vlgmr.msra.gmra.mrb[0].mxu0 %vm207_vm2, %v201_v9 }
 0x136   : > { %288 = sbr.rel (%p497_p5) target bundleno = 333 (0x14d), region = 48 }
 0x13b   : > { %v904_v10 = vpop.f32.mrb[0].mxu0 }
 0x13c   : > { %v525_v11 = vpop.f32.mrb[1].mxu0  ;;  %v305_v12 = vrot.slane (!%p497_p5), %v904_v10, 4  ;;  %v314_v13 = vmul.f32 (!%p497_p5), %v904_v10, %v904_v10 }
 0x13e   : > { %v306_v15 = vadd.f32 %v305_v12, %v904_v10  ;;  %v315_v16 = vrot.slane %v314_v13, 4 }
 0x140   : > { %v307_v17 = vrot.slane %v306_v15, 2  ;;  %v316_v18 = vadd.f32 %v315_v16, %v314_v13 }
 0x142   : > { %v308_v19 = vadd.f32 %v307_v17, %v306_v15  ;;  %v317_v20 = vrot.slane %v316_v18, 2 }
 0x144   : > { %v309_v21 = vrot.slane %v308_v19, 1  ;;  %v318_v22 = vadd.f32 %v317_v20, %v316_v18 }
 0x146   : > { %v310_v24 = vadd.f32 %v309_v21, %v308_v19  ;;  %v319_v25 = vrot.slane %v318_v22, 1 }
 0x148   : > { %v311_v27 = vadd.f32 %v310_v24, %v304_v23  ;;  %v320_v28 = vadd.f32 %v319_v25, %v318_v22 }
 0x14a   : > { %312 = vst [vmem:[#allocation2] sm:$0x1] %v311_v27  ;;  %v321_v29 = vadd.f32 %v320_v28, %v313_v26 }
 0x14c   : > { %322 = vst [vmem:[#allocation3] sm:$0x1] %v321_v29 }
 0x14d PF: > { %p498_p8 = scmp.ne.s32.totalorder %s742_s12, 1 }
 0x14e   : > { %v344_v30 = vlaneseq (!%p498_p8)  ;;  %v501_v51 = vld [vmem:[#allocation9] ss:$0 sm:$0xff] (!%p498_p8)  ;;  %v502_v54 = vld [vmem:[#allocation9 + $0x1] ss:$0 sm:$0xff] (!%p498_p8)  ;;  %v382_v56 = vmax.f32 (!%p498_p8), %v904_v10, 0.0 }
 0x14f   : > { %326 = sbr.rel (%p498_p8) target bundleno = 659 (0x293), region = 56 }
 0x150   : > { %v345_v31 = vand.u32 (!%p498_p8), 127, %v344_v30  ;;  %v383_v61 = vadd.f32 (!%p498_p8), 1e-12, %v382_v56 }
 0x151   : > { %v331_v37 = vld [vmem:[#allocation2] sm:$0x1] (!%p498_p8) }
 0x152   : > { %vm350_vm3 = vcmp.ge.s32.totalorder (!%p498_p8), %v345_v31, 19  ;;  %vm351_vm4 = vcmp.lt.s32.totalorder (!%p498_p8), %v345_v31, 23  ;;  %v332_v38 = vmul.f32 (!%p498_p8), 0.125, %v331_v37  ;;  %vm347_vm6 = vcmp.ge.s32.totalorder (!%p498_p8), %v345_v31, 16 }
 0x153   : > { %vm912_vm5 = vmand (!%p498_p8), %vm350_vm3, %vm351_vm4  ;;  %v333_v39 = vld [vmem:[#allocation3] sm:$0x1] (!%p498_p8)  ;;  %vm348_vm7 = vcmp.lt.s32.totalorder (!%p498_p8), %v345_v31, 19  ;;  %vm346_vm10 = vcmp.lt.s32.totalorder (!%p498_p8), %v345_v31, 16 }
 0x154   : > { %v386_v33 = vsel (!%p498_p8), %vm912_vm5, %v904_v10, -1e+30  ;;  %v334_v40 = vmul.f32 (!%p498_p8), 0.125, %v333_v39  ;;  %v335_v41 = vmul.f32 (!%p498_p8), %v332_v38, %v332_v38  ;;  %338 = vst [vmem:[#allocation2] sm:$0x1] (!%p498_p8), %v332_v38  ;;  %vm349_vm9 = vmand (!%p498_p8), %vm347_vm6, %vm348_vm7 }
 0x155   : > { %387 = vmax.xlane.f32.xlu0 (!%p498_p8), %v386_v33 }
 0x156   : > { %v336_v42 = vsub.f32 %v334_v40, %v335_v41 }
 0x158   : > { %v337_v44 = vmax.f32 %v336_v42, 0.0 }
 0x15a   : > { %v339_v45 = vadd.f32 1e-05, %v337_v44 }
 0x15b   : > { %v499_v47 = vld [vmem:[#allocation2] ss:$0 sm:$0xff] }
 0x15c   : > { %v359_v48 = vsub.f32 %v904_v10, %v499_v47 }
 0x1e2   : > { %v388_v34 = vpop.xlane.xlu0 %387 }
 0x1e3   : > { %v389_v35 = vsub.f32 %v386_v33, %v388_v34  ;;  %v396_v59 = vsub.f32 %v904_v10, %v388_v34 }
 0x1e5   : > { %v390_v36 = vmul.f32 1.442695, %v389_v35 }
 0x1e7   : > { %600 = vpow2.f32 %v390_v36 }
 0x1e8   : > { %602 = vrsqrt.f32 %v339_v45 }
 0x1f1   : > { %v601_v43 = vpop.eup %600 }
 0x1f2   : > { %392 = vadd.xlane.f32.xlu0 %v601_v43  ;;  %v603_v46 = vpop.eup %602 }
 0x1f3   : > { %341 = vst [vmem:[#allocation3] sm:$0x1] %v603_v46 }
 0x1fa   : > { %v500_v49 = vld [vmem:[#allocation3] ss:$0 sm:$0xff] }
 0x1fb   : > { %v366_v50 = vmul.f32 %v500_v49, %v359_v48 }
 0x1fd   : > { %v372_v53 = vmul.f32 %v501_v51, %v366_v50 }
 0x1ff   : > { %v378_v55 = vadd.f32 %v502_v54, %v372_v53 }
 0x201   : > { %v380_v58 = vmul.f32 0.2, %v378_v55  ;;  %vm379_vm8 = vcmp.ge.f32.partialorder %v378_v55, 0.0 }
 0x203   : > { %v381_v63 = vsel %vm379_vm8, %v378_v55, %v380_v58 }
 0x27f   : > { %v393_v52 = vpop.xlane.xlu0 %392 }
 0x280   : > { %604 = vlog2.f32 %v393_v52 }
 0x28a   : > { %v605_v57 = vpop.eup %604 }
 0x28b   : > { %v395_v60 = vmul.f32 0.6931472, %v605_v57 }
 0x28d   : > { %v397_v62 = vsub.f32 %v396_v59, %v395_v60 }
 0x28f   : > { %v398_v0 = vsel %vm912_vm5, %v397_v62, %v904_v10 }
 0x290   : > { %v401_v1 = vsel %vm349_vm9, %v383_v61, %v398_v0 }
 0x291   : > { %v404_v2 = vsel %vm346_vm10, %v381_v63, %v401_v1 }
 0x292   : > { %405 = vst [vmem:[#allocation10] sm:$0xff] %v404_v2 }
 0x293 PF: > { %p927_p10 = scmp.eq.s32.totalorder %s486_s17, 1  ;;  %s761_s18 = smov [#allocation10]  }
 0x294   : > { %s415_s19 = sshll.u32 %s761_s18, 4  ;;  %s416_s19 = int_to_ptr.vmem [resolvable:$true] %s415_s19 }
 0x295   : > { %s690_s20 = scalar_lea.vmem %s416_s19, 128  ;;  %p697_p6 = scmp.lt.s32.totalorder %s416_s19, %s416_s19 }
 0x296   : > { %p691_p11 = scmp.ne.s32.totalorder %s416_s19, %s690_s20  ;;  %p698_p0 = scmp.lt.s32.totalorder %s690_s20, %s690_s20 }
 0x298   : > { %p692_p12 = pnand %p691_p11, %p927_p10  ;;  %p699_p1 = por %p698_p0, %p697_p6 }
 0x29a   : > { %p693_p13 = pneg %p692_p12 }
 0x29c   : > { %p700_p4 = pnand %p699_p1, %p693_p13 }
 0x29e   : > { %703 = shalt.err (!%p700_p4)
}
 0x29f   : > { %s704_s17 = scalar_lea.hbm %s965_s3, 128 }
 0x2a0   : > { %p705_p7 = scmp.ne.s32.totalorder %s965_s3, %s704_s17  ;;  %p710_p3 = scmp.lt.u32.totalorder %s704_s17, %s965_s3 }
 0x2a2   : > { %p706_p9 = pnand %p705_p7, %p927_p10 }
 0x2a4   : > { %p707_p2 = pneg %p706_p9 }
 0x2a6   : > { %p712_p5 = pnand %p710_p3, %p707_p2 }
 0x2a8   : > { %715 = shalt.err (!%p712_p5)
}
 0x2a9   : > { %545 = dma.vmem_to_hbm [thread:$0]  (%p927_p10), %s416_s19, 128, %s965_s3, [#allocation6]  }
 0x2aa   : > { %737 = dma.done.wait (%p927_p10), [#allocation6], 128  }
 0x2ab   : > { %739 = vsyncadd (%p927_p10), [#allocation6], 4294967168 }
 0x2ac PF: > { %s16_s14 = sadd.s32 1, %s750_s14   ;;  %s979_s12 = smov %s746_s13 }
 0x2ad   : > { %p13_p8 = scmp.ge.s32.totalorder %s16_s14, 4   ;;  %s980_s13 = smov %s982_s21 }
 0x2af   :  { %15 = sbr.rel (!%p13_p8) target bundleno = 4 (0x4), region = 87 }
 0x2b6   :  { %428 = vsyncpa [#allocation5], 1 }
 0x2b7   :  { %430 = vsyncpa [#allocation5 + $0x1], 1 }
 0x2b8   :  { %431 = vsyncpa [#allocation8], 1 }
 0x2b9   :  { %432 = vsyncpa [#allocation6], 1 }
 0x2ba   :  { %434 = vsyncpa [#allocation6 + $0x1], 1 }

</bundles_post_ra>
